<compile_context>
chip_gen: v7x
topology: tpu7x:2x2x1
jax: 0.10.0
libtpu: 0.0.40
codegen_flags: <defaults>
</compile_context>

<pallas_src>
import functools
import math

import jax
import jax.numpy as jnp
from jax.experimental import pallas as pl
from jax.experimental.pallas import tpu as pltpu


# ----------------------------- kernels --------------------------------------

def _pool_mean_kernel(x_ref, p_ref, o_ref):
    """x_ref: (tb, ncin); p_ref: (ncin, ncout) pooling matrix; o_ref: (tb, ncout)."""
    o_ref[...] = jnp.dot(
        x_ref[...], p_ref[...], preferred_element_type=jnp.float32
    ).astype(o_ref.dtype)


def _pool_max_kernel(xg_ref, o_ref):
    """xg_ref: (tb, ncout, kint) grouped input; o_ref: (tb, ncout)."""
    o_ref[...] = jnp.max(xg_ref[...], axis=-1).astype(o_ref.dtype)


def _pool_trunc_kernel(x_ref, o_ref, *, ncout):
    """x_ref: (tb, ncin); o_ref: (tb, ncout) = x[:, :ncout]."""
    o_ref[...] = x_ref[:, :ncout].astype(o_ref.dtype)


# ----------------------------- wrapper ---------------------------------------

def pooling_linear(x, ncin, ncout, agg='mean'):
    """Pallas implementation of PoolingLinear.forward. x: (B, ncin)."""
    B, C = x.shape
    assert C == ncin, f"expected x.shape[1] == {ncin}, got {C}"

    # Batch tile: largest tile that keeps blocks tiny in VMEM; edge blocks are
    # safe because every output row depends only on its own input row.
    tile_b = B if B <= 512 else 512
    grid = (pl.cdiv(B, tile_b),)
    cparams = pltpu.CompilerParams(
        dimension_semantics=("parallel",),
        vmem_limit_bytes=32 * 1024 * 1024,
    )

    if agg == 'trunc':
        return pl.pallas_call(
            functools.partial(_pool_trunc_kernel, ncout=ncout),
            out_shape=jax.ShapeDtypeStruct((B, ncout), x.dtype),
            grid=grid,
            in_specs=[pl.BlockSpec((tile_b, ncin), lambda i: (i, 0))],
            out_specs=pl.BlockSpec((tile_b, ncout), lambda i: (i, 0)),
            compiler_params=cparams,
        )(x)

    kf = 1.0 * ncin / ncout
    kint = int(kf)

    if agg == 'mean':
        # Pooling matrix: P[r, o] = sqrt(k)/int(k) if r in group o (r < ncout*int(k)),
        # else 0.  Zero rows drop the truncated tail columns for free.
        scale = math.sqrt(kf) / kint
        rows = jnp.arange(ncin)
        cols = jnp.arange(ncout)
        pool = jnp.where(
            (rows[:, None] // kint == cols[None, :]) & (rows[:, None] < ncout * kint),
            scale, 0.0,
        ).astype(x.dtype)

        return pl.pallas_call(
            _pool_mean_kernel,
            out_shape=jax.ShapeDtypeStruct((B, ncout), x.dtype),
            grid=grid,
            in_specs=[
                pl.BlockSpec((tile_b, ncin), lambda i: (i, 0)),
                pl.BlockSpec((ncin, ncout), lambda i: (0, 0)),
            ],
            out_specs=pl.BlockSpec((tile_b, ncout), lambda i: (i, 0)),
            compiler_params=cparams,
        )(x, pool)

    if agg == 'max':
        # Row-major reshape is metadata-only (no extra HBM pass).
        xg = x[:, :ncout * kint].reshape(B, ncout, kint)
        return pl.pallas_call(
            _pool_max_kernel,
            out_shape=jax.ShapeDtypeStruct((B, ncout), x.dtype),
            grid=grid,
            in_specs=[pl.BlockSpec((tile_b, ncout, kint), lambda i: (i, 0, 0))],
            out_specs=pl.BlockSpec((tile_b, ncout), lambda i: (i, 0)),
            compiler_params=cparams,
        )(xg)

    raise ValueError(f"unknown agg: {agg}")


# ----------------------------- reference & test -------------------------------

def _reference(x, ncin, ncout, agg):
    """Pure-JAX mirror of the PyTorch forward."""
    if agg == 'trunc':
        return x[:, :ncout]
    k = 1.0 * ncin / ncout
    g = x[:, :ncout * int(k)].reshape(x.shape[0], ncout, -1)
    if agg == 'mean':
        return math.sqrt(k) * jnp.mean(g, axis=2)
    if agg == 'max':
        return jnp.max(g, axis=2)
    raise ValueError(agg)


if __name__ == "__main__":
    B, NCIN, NCOUT = 8, 32, 8   # k = 4

    key = jax.random.PRNGKey(0)
    x = jax.random.normal(key, (B, NCIN), jnp.float32)

    ok = True
    for agg in ('mean', 'max', 'trunc'):
        out = jax.block_until_ready(pooling_linear(x, NCIN, NCOUT, agg=agg))
        ref = jax.block_until_ready(_reference(x, NCIN, NCOUT, agg))
        assert out.shape == ref.shape, (agg, out.shape, ref.shape)
        if not bool(jnp.allclose(out, ref, atol=1e-5, rtol=1e-5)):
            ok = False
            print(f"MISMATCH agg={agg}: max abs err = "
                  f"{float(jnp.max(jnp.abs(out - ref)))}")

    if ok:
        print("KERNEL_OK")
</pallas_src>

<mosaic_0001>
module attributes {stable_mosaic.version = 11 : i64} {
  func.func @_pool_mean_kernel(%arg0: i32, %arg1: memref<8x32xf32, #tpu.memory_space<vmem>>, %arg2: memref<32x8xf32, #tpu.memory_space<vmem>>, %arg3: memref<8x8xf32, #tpu.memory_space<vmem>>) attributes {dimension_semantics = [#tpu.dimension_semantics<parallel>], iteration_bounds = array<i64: 1>, scalar_prefetch = 0 : i64, scratch_operands = 0 : i64, tpu.core_type = #tpu.core_type<tc>, window_params = [{transform_indices = @transform_0, window_bounds = array<i64: 8, 32>}, {pipeline_mode = #tpu.pipeline_mode<synchronous>, transform_indices = @transform_1, window_bounds = array<i64: 32, 8>}, {transform_indices = @transform_2, window_bounds = array<i64: 8, 8>}]} {
    %c0 = arith.constant 0 : index
    %c0_0 = arith.constant 0 : index
    %0 = vector.load %arg1[%c0, %c0_0] : memref<8x32xf32, #tpu.memory_space<vmem>>, vector<8x32xf32>
    %c0_1 = arith.constant 0 : index
    %c0_2 = arith.constant 0 : index
    %1 = vector.load %arg2[%c0_1, %c0_2] : memref<32x8xf32, #tpu.memory_space<vmem>>, vector<32x8xf32>
    %cst = arith.constant dense<0.000000e+00> : vector<8x8xf32>
    %2 = tpu.matmul %0, %1, %cst {dimension_numbers = #tpu.dot_dimension_numbers<[1], [0], [0], [1], [0, 0, 1, 1], [], []>} : vector<8x32xf32>, vector<32x8xf32>, vector<8x8xf32> -> vector<8x8xf32>
    %c0_3 = arith.constant 0 : index
    %c0_4 = arith.constant 0 : index
    %3 = vector.load %arg3[%c0_3, %c0_4] : memref<8x8xf32, #tpu.memory_space<vmem>>, vector<8x8xf32>
    tpu.vector_store %arg3[%c0_3, %c0_4], %2 {strides = array<i32>} : memref<8x8xf32, #tpu.memory_space<vmem>>, vector<8x8xf32>,
    return
  }
  func.func @transform_0(%arg0: i32) -> (i32, i32) {
    %c0_i32 = arith.constant 0 : i32
    %c0_i32_0 = arith.constant 0 : i32
    return %arg0, %c0_i32 : i32, i32
  }
  func.func @transform_1(%arg0: i32) -> (i32, i32) {
    %c0_i32 = arith.constant 0 : i32
    %c0_i32_0 = arith.constant 0 : i32
    %c0_i32_1 = arith.constant 0 : i32
    return %c0_i32, %c0_i32_0 : i32, i32
  }
  func.func @transform_2(%arg0: i32) -> (i32, i32) {
    %c0_i32 = arith.constant 0 : i32
    %c0_i32_0 = arith.constant 0 : i32
    return %arg0, %c0_i32 : i32, i32
  }
}

</mosaic_0001>

<bundles_post_ra>
// kernel: tpu_custom_call.1
= control target key start
LH: loop header
LB: loop body
LE: loop exit
PB: predicated region body
PF: predicated region fallthrough
CT: control target
= control target key end

     0   :  { %v158_v3 = vmov 0.0|0.0   ;;  %vm159_vm0 = vmmov 0   ;;  %v160_v6 = vmov 0.0   ;;  %s204_s0 = inlined_call_operand.vmem [shape: f32[8,32], index: 0, kind: input, shape index: {}]   ;;  %s205_s1 = inlined_call_operand.vmem [shape: f32[32,8], index: 1, kind: input, shape index: {}]   ;;  %s206_s2 = inlined_call_operand.hbm [shape: f32[8,8], index: 2, kind: output, shape index: {}]  }
   0x1   :  { %v13_v0 = vld [vmem:[%s205_s1] sm:$0xff]  ;;  %v14_v1 = vld [vmem:[%s205_s1 + $0x8] sm:$0xff]  ;;  %v15_v2 = vld [vmem:[%s205_s1 + $0x10] sm:$0xff]  ;;  %124 = vmatprep.subr.bf16.mxu0 %v158_v3  ;;  %121 = vmatprep.mubr.msk.f32.mxu0 %vm159_vm0, %v160_v6 }
   0x2   :  { %v125_v4 = vpack.c.bf16 %v14_v1, %v13_v0  ;;  %v16_v5 = vld [vmem:[%s205_s1 + $0x18] sm:$0xff] }
   0x3   :  { %7 = vsyncpa [#allocation3], 0  ;;  %v128_v7 = vpack.c.bf16 %v16_v5, %v15_v2  ;;  %v12_v8 = vld [vmem:[%s204_s0] sm:$0xff]  ;;  %vm17_vm1 = vcmask 261120   ;;  %s161_s19 = smov [#allocation2]   ;;  %vm91_vm2 = vcmask 64512  }
   0x4   :  { %126 = vmatpush3.bf16.msra.mxu0 %v125_v4  ;;  %s99_s20 = sshll.u32 %s161_s19, 4  ;;  %s100_s20 = int_to_ptr.vmem [resolvable:$true] %s99_s20 }
   0x5   :  { %127 = vmatprep.subr.bf16.mxu0 %v158_v3  ;;  %s134_s1 = scalar_lea.vmem %s100_s20, 128  ;;  %p139_p1 = scmp.lt.s32.totalorder %s100_s20, %s100_s20 }
   0x6   :  { %p135_p0 = scmp.ne.s32.totalorder %s100_s20, %s134_s1  ;;  %p140_p2 = scmp.lt.s32.totalorder %s134_s1, %s134_s1 }
   0x8   :  { %129 = vmatpush3.bf16.msra.mxu0 %v128_v7  ;;  %p141_p3 = por %p140_p2, %p139_p1 }
   0xa   :  { %p142_p4 = pnand %p141_p3, %p135_p0 }
   0xb   :  { %122 = vmatmul.mubr.msk.f32.vlgmr.msra.gmra.mrb[0].mxu0 %vm17_vm1, %v12_v8 }
  0xde   :  { %v87_v9 = vpop.f32.mrb[0].mxu0 }
  0xdf   :  { %92 = vst.msk [vmem:[#allocation2] sm:$0xff] %vm91_vm2, %v87_v9  ;;  %v123_v10 = vpop.f32.mrb[1].mxu0 }
  0xe0   :  { %145 = shalt.err (!%p142_p4)
}
  0xe1   :  { %s146_s0 = scalar_lea.hbm %s206_s2, 128 }
  0xe2   :  { %p147_p5 = scmp.ne.s32.totalorder %s206_s2, %s146_s0  ;;  %p150_p6 = scmp.lt.u32.totalorder %s146_s0, %s206_s2 }
  0xe4   :  { %p152_p7 = pnand %p150_p6, %p147_p5 }
  0xe6   :  { %155 = shalt.err (!%p152_p7)
}
  0xe7   :  { %102 = dma.vmem_to_hbm [thread:$0]  %s100_s20, 128, %s206_s2, [#allocation3]  }
  0xe8   :  { %156 = dma.done.wait [#allocation3], 128  }
  0xe9   :  { %157 = vsyncadd [#allocation3], 4294967168 }
  0xea   :  { %106 = vsyncpa [#allocation3], 1 }

</bundles_post_ra>
